<compile_context>
chip_gen: v6e
topology: v6e:2x2x1
jax: 0.10.0
libtpu: 0.0.40
codegen_flags: <defaults>
</compile_context>

<pallas_src>
import functools

import jax
import jax.numpy as jnp
from jax.experimental import pallas as pl
from jax.experimental.pallas import tpu as pltpu

_SUBLANE = 8     # f32 sublane width
_LANE = 128      # vreg lane width (only used for VMEM-cost accounting now)


def _round_up(x, m):
    return (x + m - 1) // m * m


def _vmem_tile_bytes(rows, cols, dtype_bytes=4):
    """Bytes one (rows, cols) f32 tile occupies in VMEM (lane/sublane padded)."""
    return _round_up(rows, _SUBLANE) * _round_up(cols, _LANE) * dtype_bytes


def _mlp_kernel(x_ref, w1_ref, b1_ref, w2_ref, b2_ref, o_ref, *, use_bf16):
    x = x_ref[...]
    w1 = w1_ref[...]
    w2 = w2_ref[...]
    if use_bf16:
        # TODO(synk): enable by default on v6e/v7x once the accuracy budget allows.
        x = x.astype(jnp.bfloat16)
        w1 = w1.astype(jnp.bfloat16)
        w2 = w2.astype(jnp.bfloat16)
    # hidden layer: Linear(in, in) + ReLU   (f32 MXU accumulation)
    h = jnp.dot(x, w1, preferred_element_type=jnp.float32) + b1_ref[...]
    h = jnp.maximum(h, 0.0)
    if use_bf16:
        h = h.astype(jnp.bfloat16)
    # output layer: Linear(in, out)
    y = jnp.dot(h, w2, preferred_element_type=jnp.float32) + b2_ref[...]
    o_ref[...] = y.astype(o_ref.dtype)


def encode_single_output(x, w1, b1, w2, b2, *, block_m=None, use_bf16=False):
    """x: (B, in_size); w1: (in, in); b1: (1, in); w2: (in, out); b2: (1, out)."""
    B, in_size = x.shape
    out_size = w2.shape[1]
    f32 = jnp.float32

    # No-op casts when already f32 (convert_element_type with same dtype is free).
    x = x.astype(f32)
    w1 = w1.astype(f32)
    b1 = b1.reshape(1, in_size).astype(f32)
    w2 = w2.astype(f32)
    b2 = b2.reshape(1, out_size).astype(f32)

    # ---- generation-aware VMEM budget (64 MiB on v7x, 128 MiB on v5e/v6e) ----
    try:
        vmem_capacity = int(pltpu.get_tpu_info().vmem_capacity_bytes)
    except Exception:  # conservative fallback (v7x-sized)
        vmem_capacity = 64 << 20
    vmem_budget = int(vmem_capacity * 0.75)          # ~25% headroom

    # Per-batch-row VMEM cost: tiles are lane-padded to 128 internally.
    #   2 x-buffers + 2 out-buffers + hidden temp + intermediate slack.
    per_row_vmem = (2 * _round_up(in_size, _LANE)
                    + 2 * _round_up(out_size, _LANE)
                    + 2 * _round_up(in_size, _LANE)) * 4
    weights_vmem = 2 * (_vmem_tile_bytes(in_size, in_size)
                        + _vmem_tile_bytes(1, in_size)
                        + _vmem_tile_bytes(in_size, out_size)
                        + _vmem_tile_bytes(1, out_size))

    # ---- batch tile: ~4 even grid steps, >=1024 rows, capped by VMEM ----
    if block_m is None:
        tm_target = max(1024, _round_up(pl.cdiv(B, 4), _SUBLANE))
    else:
        tm_target = _round_up(block_m, _SUBLANE)
    tm_cap = (vmem_budget - weights_vmem - (2 << 20)) // per_row_vmem
    tm_cap = max(_SUBLANE, (tm_cap // _SUBLANE) * _SUBLANE)
    tm = min(tm_target, tm_cap, _round_up(B, _SUBLANE))

    grid = (pl.cdiv(B, tm),)   # ragged last block handled by masked writeback

    vmem_need = tm * per_row_vmem + weights_vmem + (4 << 20)
    vmem_limit = int(min(max(vmem_need, 32 << 20), int(vmem_capacity * 0.9)))

    # Real (unpadded) cost for XLA's scheduler.
    flops = 2 * B * (in_size * in_size + in_size * out_size)
    bytes_accessed = 4 * (B * (in_size + out_size)
                          + in_size * in_size + in_size
                          + in_size * out_size + out_size)
    cost = pl.CostEstimate(flops=flops, transcendentals=0,
                           bytes_accessed=bytes_accessed)

    kernel = functools.partial(_mlp_kernel, use_bf16=use_bf16)

    out = pl.pallas_call(
        kernel,
        out_shape=jax.ShapeDtypeStruct((B, out_size), f32),
        grid=grid,
        in_specs=[
            pl.BlockSpec((tm, in_size), lambda i: (i, 0)),        # x: streamed
            pl.BlockSpec((in_size, in_size), lambda i: (0, 0)),   # w1: resident
            pl.BlockSpec((1, in_size), lambda i: (0, 0)),         # b1: resident
            pl.BlockSpec((in_size, out_size), lambda i: (0, 0)),  # w2: resident
            pl.BlockSpec((1, out_size), lambda i: (0, 0)),        # b2: resident
        ],
        out_specs=pl.BlockSpec((tm, out_size), lambda i: (i, 0)),
        compiler_params=pltpu.CompilerParams(
            dimension_semantics=("parallel",),
            vmem_limit_bytes=vmem_limit,
        ),
        cost_estimate=cost,
    )(x, w1, b1, w2, b2)

    return out


def init_params(key, in_size, out_size):
    """Deterministic synthetic init (PyTorch Linear-style uniform fan-in)."""
    k1, k2, k3, k4 = jax.random.split(key, 4)
    bound = 1.0 / jnp.sqrt(in_size)
    # stored as (in, out): equivalent to torch's (out, in) weight, transposed.
    w1 = jax.random.uniform(k1, (in_size, in_size), jnp.float32, -bound, bound)
    b1 = jax.random.uniform(k2, (1, in_size), jnp.float32, -bound, bound)
    w2 = jax.random.uniform(k3, (in_size, out_size), jnp.float32, -bound, bound)
    b2 = jax.random.uniform(k4, (1, out_size), jnp.float32, -bound, bound)
    return w1, b1, w2, b2


def _reference(x, w1, b1, w2, b2):
    return jnp.maximum(x @ w1 + b1, 0.0) @ w2 + b2


if __name__ == "__main__":
    in_size, out_size = 32, 16
    key = jax.random.PRNGKey(0)
    kx, kp, kx2 = jax.random.split(key, 3)
    w1, b1, w2, b2 = init_params(kp, in_size, out_size)

    # Small (module-consistent) shape check.
    batch = 8
    x = jax.random.normal(kx, (batch, in_size), jnp.float32)
    out = encode_single_output(x, w1, b1, w2, b2)
    jax.block_until_ready(out)
    ref = _reference(x, w1, b1, w2, b2)
    assert out.shape == (batch, out_size)
    assert jnp.allclose(out, ref, atol=1e-5, rtol=1e-5)

    # Larger batch exercising the multi-step (even) batch grid / megacore path.
    big_batch = 4096
    xb = jax.random.normal(kx2, (big_batch, in_size), jnp.float32)
    out_b = encode_single_output(xb, w1, b1, w2, b2)
    jax.block_until_ready(out_b)
    ref_b = _reference(xb, w1, b1, w2, b2)
    assert out_b.shape == (big_batch, out_size)
    assert jnp.allclose(out_b, ref_b, atol=1e-4, rtol=1e-4)

    # Ragged batch (not a multiple of the tile) exercising the masked last block.
    odd_batch = 1030
    xo = jax.random.normal(jax.random.PRNGKey(7), (odd_batch, in_size), jnp.float32)
    out_o = encode_single_output(xo, w1, b1, w2, b2)
    jax.block_until_ready(out_o)
    ref_o = _reference(xo, w1, b1, w2, b2)
    assert out_o.shape == (odd_batch, out_size)
    assert jnp.allclose(out_o, ref_o, atol=1e-4, rtol=1e-4)

    print("KERNEL_OK")
</pallas_src>

<mosaic_0001>
module attributes {stable_mosaic.version = 11 : i64} {
  func.func @_mlp_kernel(%arg0: i32, %arg1: memref<8x32xf32, #tpu.memory_space<vmem>>, %arg2: memref<32x32xf32, #tpu.memory_space<vmem>>, %arg3: memref<1x32xf32, #tpu.memory_space<vmem>>, %arg4: memref<32x16xf32, #tpu.memory_space<vmem>>, %arg5: memref<1x16xf32, #tpu.memory_space<vmem>>, %arg6: memref<8x16xf32, #tpu.memory_space<vmem>>) attributes {dimension_semantics = [#tpu.dimension_semantics<parallel>], iteration_bounds = array<i64: 1>, scalar_prefetch = 0 : i64, scratch_operands = 0 : i64, tpu.core_type = #tpu.core_type<tc>, window_params = [{transform_indices = @transform_0, window_bounds = array<i64: 8, 32>}, {pipeline_mode = #tpu.pipeline_mode<synchronous>, transform_indices = @transform_1, window_bounds = array<i64: 32, 32>}, {pipeline_mode = #tpu.pipeline_mode<synchronous>, transform_indices = @transform_2, window_bounds = array<i64: 1, 32>}, {pipeline_mode = #tpu.pipeline_mode<synchronous>, transform_indices = @transform_3, window_bounds = array<i64: 32, 16>}, {pipeline_mode = #tpu.pipeline_mode<synchronous>, transform_indices = @transform_4, window_bounds = array<i64: 1, 16>}, {transform_indices = @transform_5, window_bounds = array<i64: 8, 16>}]} {
    %c0 = arith.constant 0 : index
    %c0_0 = arith.constant 0 : index
    %0 = vector.load %arg1[%c0, %c0_0] : memref<8x32xf32, #tpu.memory_space<vmem>>, vector<8x32xf32>
    %c0_1 = arith.constant 0 : index
    %c0_2 = arith.constant 0 : index
    %1 = vector.load %arg2[%c0_1, %c0_2] : memref<32x32xf32, #tpu.memory_space<vmem>>, vector<32x32xf32>
    %c0_3 = arith.constant 0 : index
    %c0_4 = arith.constant 0 : index
    %2 = vector.load %arg4[%c0_3, %c0_4] : memref<32x16xf32, #tpu.memory_space<vmem>>, vector<32x16xf32>
    %cst = arith.constant dense<0.000000e+00> : vector<8x32xf32>
    %3 = tpu.matmul %0, %1, %cst {dimension_numbers = #tpu.dot_dimension_numbers<[1], [0], [0], [1], [0, 0, 1, 1], [], []>} : vector<8x32xf32>, vector<32x32xf32>, vector<8x32xf32> -> vector<8x32xf32>
    %c0_5 = arith.constant 0 : index
    %c0_6 = arith.constant 0 : index
    %4 = vector.load %arg3[%c0_5, %c0_6] : memref<1x32xf32, #tpu.memory_space<vmem>>, vector<1x32xf32>
    %5 = vector.broadcast %4 : vector<1x32xf32> to vector<8x32xf32>
    %6 = arith.addf %3, %5 : vector<8x32xf32>
    %cst_7 = arith.constant 0.000000e+00 : f32
    %7 = vector.broadcast %cst_7 : f32 to vector<8x32xf32>
    %8 = arith.maximumf %6, %7 : vector<8x32xf32>
    %cst_8 = arith.constant dense<0.000000e+00> : vector<8x16xf32>
    %9 = tpu.matmul %8, %2, %cst_8 {dimension_numbers = #tpu.dot_dimension_numbers<[1], [0], [0], [1], [0, 0, 1, 1], [], []>} : vector<8x32xf32>, vector<32x16xf32>, vector<8x16xf32> -> vector<8x16xf32>
    %c0_9 = arith.constant 0 : index
    %c0_10 = arith.constant 0 : index
    %10 = vector.load %arg5[%c0_9, %c0_10] : memref<1x16xf32, #tpu.memory_space<vmem>>, vector<1x16xf32>
    %11 = vector.broadcast %10 : vector<1x16xf32> to vector<8x16xf32>
    %12 = arith.addf %9, %11 : vector<8x16xf32>
    %c0_11 = arith.constant 0 : index
    %c0_12 = arith.constant 0 : index
    %13 = vector.load %arg6[%c0_11, %c0_12] : memref<8x16xf32, #tpu.memory_space<vmem>>, vector<8x16xf32>
    tpu.vector_store %arg6[%c0_11, %c0_12], %12 {strides = array<i32>} : memref<8x16xf32, #tpu.memory_space<vmem>>, vector<8x16xf32>,
    return
  }
  func.func @transform_0(%arg0: i32) -> (i32, i32) {
    %c0_i32 = arith.constant 0 : i32
    %c0_i32_0 = arith.constant 0 : i32
    return %arg0, %c0_i32 : i32, i32
  }
  func.func @transform_1(%arg0: i32) -> (i32, i32) {
    %c0_i32 = arith.constant 0 : i32
    %c0_i32_0 = arith.constant 0 : i32
    %c0_i32_1 = arith.constant 0 : i32
    return %c0_i32, %c0_i32_0 : i32, i32
  }
  func.func @transform_2(%arg0: i32) -> (i32, i32) {
    %c0_i32 = arith.constant 0 : i32
    %c0_i32_0 = arith.constant 0 : i32
    %c0_i32_1 = arith.constant 0 : i32
    return %c0_i32, %c0_i32_0 : i32, i32
  }
  func.func @transform_3(%arg0: i32) -> (i32, i32) {
    %c0_i32 = arith.constant 0 : i32
    %c0_i32_0 = arith.constant 0 : i32
    %c0_i32_1 = arith.constant 0 : i32
    return %c0_i32, %c0_i32_0 : i32, i32
  }
  func.func @transform_4(%arg0: i32) -> (i32, i32) {
    %c0_i32 = arith.constant 0 : i32
    %c0_i32_0 = arith.constant 0 : i32
    %c0_i32_1 = arith.constant 0 : i32
    return %c0_i32, %c0_i32_0 : i32, i32
  }
  func.func @transform_5(%arg0: i32) -> (i32, i32) {
    %c0_i32 = arith.constant 0 : i32
    %c0_i32_0 = arith.constant 0 : i32
    return %arg0, %c0_i32 : i32, i32
  }
}

</mosaic_0001>

<bundles_post_ra>
// kernel: tpu_custom_call.1
= control target key start
LH: loop header
LB: loop body
LE: loop exit
PB: predicated region body
PF: predicated region fallthrough
CT: control target
= control target key end

     0   :  { %v269_v1 = vmov 0.0   ;;  %vm270_vm0 = vmmov 0   ;;  %s340_s0 = inlined_call_operand.vmem [shape: f32[8,32], index: 0, kind: input, shape index: {}]   ;;  %s341_s1 = inlined_call_operand.vmem [shape: f32[32,32], index: 1, kind: input, shape index: {}]   ;;  %s342_s2 = inlined_call_operand.vmem [shape: f32[1,32], index: 2, kind: input, shape index: {}]   ;;  %s343_s3 = inlined_call_operand.vmem [shape: f32[32,16], index: 3, kind: input, shape index: {}]   ;;  %s344_s4 = inlined_call_operand.vmem [shape: f32[1,16], index: 4, kind: input, shape index: {}]   ;;  %s345_s5 = inlined_call_operand.hbm [shape: f32[8,16], index: 5, kind: output, shape index: {}]  }
   0x1   :  { %v25_v0 = vld [vmem:[%s341_s1 + $0x18] sm:$0xff]  ;;  %222 = vmatprep.subr.mxu0 %v269_v1  ;;  %v24_v2 = vld [vmem:[%s341_s1 + $0x10] sm:$0xff]  ;;  %230 = vmatprep.mubr.msk.f32.mxu0 %vm270_vm0, %v269_v1 }
   0x2   :  { %v29_v3 = vld [vmem:[%s343_s3 + $0x18] sm:$0xff]  ;;  %223 = vmatpush3.msra.mxu0 %v25_v0  ;;  %233 = vmatprep.subr.mxu1 %v269_v1 }
   0x3   :  { %10 = vsyncpa [#allocation3], 0  ;;  %224 = vmatprep.subr.mxu0 %v269_v1  ;;  %v23_v4 = vld [vmem:[%s341_s1 + $0x8] sm:$0xff]  ;;  %234 = vmatpush3.msra.mxu1 %v29_v3  ;;  %v22_v5 = vld [vmem:[%s341_s1] sm:$0xff]  ;;  %vm37_vm1 = vcmask 261120   ;;  %s271_s13 = smov [#allocation2]  }
   0x4   :  { %225 = vmatpush3.msra.mxu0 %v24_v2  ;;  %235 = vmatprep.subr.mxu1 %v269_v1  ;;  %v21_v6 = vld [vmem:[%s340_s0] sm:$0xff]  ;;  %v28_v7 = vld [vmem:[%s343_s3 + $0x10] sm:$0xff]  ;;  %v27_v8 = vld [vmem:[%s343_s3 + $0x8] sm:$0xff]  ;;  %s200_s14 = sshll.u32 %s271_s13, 4  ;;  %vm192_vm2 = vcmask 130048   ;;  %s201_s14 = int_to_ptr.vmem [resolvable:$true] %s200_s14 }
   0x5   :  { %226 = vmatprep.subr.mxu0 %v269_v1  ;;  %241 = vmatprep.mubr.msk.f32.mxu1 %vm270_vm0, %v269_v1  ;;  %v26_v9 = vld [vmem:[%s343_s3] sm:$0xff]  ;;  %s247_s3 = scalar_lea.vmem %s201_s14, 128  ;;  %p252_p1 = scmp.lt.s32.totalorder %s201_s14, %s201_s14 }
   0x6   :  { %227 = vmatpush3.msra.mxu0 %v23_v4  ;;  %236 = vmatpush3.msra.mxu1 %v28_v7  ;;  %v208_v10 = vld [vmem:[%s342_s2] ss:$0 sm:$0xff]  ;;  %p248_p0 = scmp.ne.s32.totalorder %s201_s14, %s247_s3  ;;  %p253_p2 = scmp.lt.s32.totalorder %s247_s3, %s247_s3 }
   0x7   :  { %228 = vmatprep.subr.mxu0 %v269_v1  ;;  %237 = vmatprep.subr.mxu1 %v269_v1  ;;  %v210_v15 = vld [vmem:[%s344_s4] ss:$0 sm:$0xff] }
   0x8   :  { %229 = vmatpush3.msra.mxu0 %v22_v5  ;;  %238 = vmatpush3.msra.mxu1 %v27_v8  ;;  %p254_p3 = por %p253_p2, %p252_p1 }
   0x9   :  { %231 = vmatmul.mubr.msk.f32.vlgmr.msra.gmra.mxu0 %vm37_vm1, %v21_v6  ;;  %239 = vmatprep.subr.mxu1 %v269_v1 }
   0xa   :  { %240 = vmatpush3.msra.mxu1 %v26_v9  ;;  %p255_p4 = pnand %p254_p3, %p248_p0 }
  0xc9   :  { %v107_v11 = vpop.f32.mrf.mxu0 }
  0xca   :  { %v108_v12 = vadd.f32 %v208_v10, %v107_v11 }
  0xcb   :  { %v232_v13 = vpop.f32.mrf.mxu0 }
  0xcc   :  { %v111_v14 = vmax.f32 %v108_v12, 0.0 }
  0xce   :  { %242 = vmatmul.mubr.msk.f32.vlgmr.msra.gmra.mxu1 %vm37_vm1, %v111_v14 }
 0x18e   :  { %v188_v16 = vpop.f32.mrf.mxu1 }
 0x18f   :  { %v189_v17 = vadd.f32 %v210_v15, %v188_v16 }
 0x190   :  { %v243_v18 = vpop.f32.mrf.mxu1 }
 0x191   :  { %193 = vst.msk [vmem:[#allocation2] sm:$0xff] %vm192_vm2, %v189_v17 }
 0x192   :  { %258 = shalt.err (!%p255_p4)
}
 0x193   :  { %203 = dma.vmem_to_hbm [thread:$0]  %s201_s14, 128, %s345_s5, [#allocation3]  }
 0x194   :  { %267 = dma.done.wait [#allocation3], 128  }
 0x195   :  { %268 = vsyncadd [#allocation3], 4294967168 }
 0x196   :  { %207 = vsyncpa [#allocation3], 1 }

</bundles_post_ra>
